<compile_context>
chip_gen: v7x
topology: tpu7x:2x2x1
jax: 0.10.0
libtpu: 0.0.40
codegen_flags: <defaults>
</compile_context>

<pallas_src>
import functools

import jax
import jax.numpy as jnp
from jax.experimental import pallas as pl
from jax.experimental.pallas import tpu as pltpu

LANE = 128
SUB = 8


def _round_up(a, b):
    return ((a + b - 1) // b) * b


def ranking_head_kernel(x_ref, w1_ref, b1_ref, wa_ref, ba_ref, wv_ref, c_ref,
                        o_ref):
    """One token tile: x (tm, dim) -> out (tm,), stored as a lane-dense slab.

    Rows are independent.  For a ragged last tile the OOB rows of x_ref hold
    unspecified values; their outputs are garbage and are sliced off in the
    wrapper.  Do NOT add any cross-row reduction here.
    """
    w1 = w1_ref[...]                               # (dim, fd_p)  compute dtype
    wa = wa_ref[...]                               # (fd_p, fd_p) compute dtype
    # Cast the streamed activation tile in-kernel (VPU, hidden under the MXU)
    # instead of a wrapper-side XLA pass over the whole array in HBM.
    x = x_ref[...].astype(w1.dtype)

    # final_lin1: dim -> fd  (f32 accumulation on the MXU).
    h1 = jnp.dot(x, w1, preferred_element_type=jnp.float32) + b1_ref[...]

    # ResidualBlock first conv + ReLU (Dropout = identity at inference).
    # TODO(synk): at production fd, measure keeping h1 in f32 for this dot
    # (accuracy) vs. the bf16 re-quantization used here (speed).
    h2 = jnp.maximum(
        jnp.dot(h1.astype(wa.dtype), wa, preferred_element_type=jnp.float32)
        + ba_ref[...],
        0.0,
    )

    # Folded tail:  out = h1 @ wo + h2 @ (wb @ wo) + (bb @ wo + bo)
    # VPU multiply + lane reduce (XLU); the scalar constant comes from SMEM.
    wv = wv_ref[...]                               # (2, fd_p) f32
    out = jnp.sum(h1 * wv[0:1, :] + h2 * wv[1:2, :], axis=-1) + c_ref[0]

    # Lane-dense store of this tile's outputs.
    # TODO(synk): check in the bundle dump that this reshape does not place a
    # sublane->lane relayout on the critical path; fall back to a (tm, 1)
    # masked-store variant if it does.
    o_ref[...] = out.reshape(o_ref.shape).astype(o_ref.dtype)


@functools.partial(jax.jit, static_argnames=("tm", "compute_dtype"))
def ranking_head(Z, params, *, tm=4096, compute_dtype=jnp.bfloat16):
    """Z: (B, N, dim) -> (B, N) float32.

    Note: PyTorch's .squeeze() returns (N,) when B == 1; here the output is
    always (B, N).
    """
    B, N, dim = Z.shape
    fd = params["w1"].shape[1]
    M = B * N

    # Channel padding only for the small weight tensors; x streams unpadded.
    # 256-wide N/K tiles when fd allows (v6e/v7x MXU is 2x256^2).
    lane_mult = 256 if fd >= 256 else LANE
    fd_p = _round_up(fd, lane_mult)

    # ---------------- token tiling ----------------
    if M >= 2 * SUB * LANE:
        # Streaming regime: no pad / no copy of x; last tile may be ragged.
        tm_req = _round_up(max(tm, SUB * LANE), SUB * LANE)
        # Cap the tile so grid >= 2 (uses both v7x TensorCores).
        tm_eff = min(tm_req, _round_up(pl.cdiv(M, 2), SUB * LANE))
        grid = pl.cdiv(M, tm_eff)
        rows_out = grid * tm_eff                      # output slab is padded
        out_shape = (rows_out // LANE, LANE)          # lane-dense (8k, 128)
        out_block = (tm_eff // LANE, LANE)
    else:
        # Small-M regime: a single tile covering the whole array (block ==
        # full array extents, so no alignment padding is required anywhere).
        tm_eff = M
        grid = 1
        rows_out = M
        out_shape = (1, M)
        out_block = (1, M)

    x = Z.reshape(M, dim)                             # no pad, no cast

    # ---------------- weights (tiny; pad / cast once here) ----------------
    w1 = jnp.pad(params["w1"], ((0, 0), (0, fd_p - fd))).astype(compute_dtype)
    wa = jnp.pad(params["wa"], ((0, fd_p - fd), (0, fd_p - fd))).astype(compute_dtype)
    b1 = jnp.pad(params["b1"], ((0, 0), (0, fd_p - fd))).astype(jnp.float32)
    ba = jnp.pad(params["ba"], ((0, 0), (0, fd_p - fd))).astype(jnp.float32)

    # Algebraic folding of wb / wo / bb / bo (all linear past the ReLU input).
    wo = params["wo"].astype(jnp.float32)             # (fd, 1)
    wbo = params["wb"].astype(jnp.float32) @ wo       # (fd, 1)
    wv = jnp.concatenate([wo.T, wbo.T], axis=0)       # (2, fd) f32
    wv = jnp.pad(wv, ((0, 0), (0, fd_p - fd)))
    c = (params["bb"].astype(jnp.float32) @ wo
         + params["bo"].astype(jnp.float32)).reshape(1)   # (1,) scalar -> SMEM

    # ---------------- VMEM budget derived from the actual buffers ----------
    cd_isize = jnp.dtype(compute_dtype).itemsize
    x_isize = jnp.dtype(Z.dtype).itemsize
    dim_l = _round_up(dim, LANE)                      # VMEM lane padding of x tile
    vmem_bytes = (
        2 * tm_eff * dim_l * x_isize                  # x tiles (double-buffered)
        + 2 * _round_up(tm_eff, SUB * LANE) * 4       # out tiles
        + 2 * (_round_up(dim, SUB) * fd_p
               + fd_p * fd_p) * cd_isize              # w1, wa (2 buffers by default)
        + 2 * 3 * SUB * fd_p * 4                      # b1, ba, wv (f32)
    )
    # 25% + 2 MiB slack for compiler scratch; cap at v7x's 64 MiB physical VMEM.
    vmem_limit = int(min(max(vmem_bytes * 5 // 4 + (2 << 20), 4 << 20), 64 << 20))

    cost = pl.CostEstimate(
        flops=int(M * (2 * dim * fd_p + 2 * fd_p * fd_p + 4 * fd_p)),
        transcendentals=0,
        bytes_accessed=int(
            M * dim * x_isize                         # x stream (unpadded)
            + rows_out * 4                            # out stream
            + (dim * fd_p + fd_p * fd_p) * cd_isize   # big weights
            + (4 * fd_p + 1) * 4                      # biases / folded vectors
        ),
    )

    out = pl.pallas_call(
        ranking_head_kernel,
        out_shape=jax.ShapeDtypeStruct(out_shape, jnp.float32),
        grid_spec=pltpu.PrefetchScalarGridSpec(
            num_scalar_prefetch=0,
            grid=(grid,),
            in_specs=[
                # x tile streams; last block dim equals the full channel extent
                # so no 128-padding of the activation is needed.
                pl.BlockSpec((tm_eff, dim), lambda i: (i, 0)),
                # Constant-index weight operands stay VMEM-resident.
                # TODO(synk): single-buffer these via pipeline_mode=pl.Buffered(1)
                # once verified on the target jax version (saves ~2x weight VMEM
                # on v7x at production dim/fd).
                pl.BlockSpec((dim, fd_p), lambda i: (0, 0)),       # w1
                pl.BlockSpec((1, fd_p), lambda i: (0, 0)),         # b1
                pl.BlockSpec((fd_p, fd_p), lambda i: (0, 0)),      # wa
                pl.BlockSpec((1, fd_p), lambda i: (0, 0)),         # ba
                pl.BlockSpec((2, fd_p), lambda i: (0, 0)),         # [wo^T; (wb@wo)^T]
                pl.BlockSpec(memory_space=pltpu.MemorySpace.SMEM), # folded scalar c
            ],
            out_specs=pl.BlockSpec(out_block, lambda i: (i, 0)),
        ),
        compiler_params=pltpu.CompilerParams(
            dimension_semantics=("parallel",),
            vmem_limit_bytes=vmem_limit,
        ),
        cost_estimate=cost,
    )(x, w1, b1, wa, ba, wv, c)

    return out.reshape(rows_out)[:M].reshape(B, N)


def init_params(key, dim, fd):
    """Deterministic synthetic parameters. Weights stored as (in, out) = conv_weight.T."""
    ks = jax.random.split(key, 8)
    scale = 0.1
    return {
        "w1": scale * jax.random.normal(ks[0], (dim, fd), jnp.float32),
        "b1": scale * jax.random.normal(ks[1], (1, fd), jnp.float32),
        "wa": scale * jax.random.normal(ks[2], (fd, fd), jnp.float32),
        "ba": scale * jax.random.normal(ks[3], (1, fd), jnp.float32),
        "wb": scale * jax.random.normal(ks[4], (fd, fd), jnp.float32),
        "bb": scale * jax.random.normal(ks[5], (1, fd), jnp.float32),
        "wo": scale * jax.random.normal(ks[6], (fd, 1), jnp.float32),
        "bo": scale * jax.random.normal(ks[7], (1, 1), jnp.float32),
    }


def ranking_head_ref(Z, p):
    """Pure-JAX reference mirroring the PyTorch forward (eval mode)."""
    h1 = Z @ p["w1"] + p["b1"]
    h2 = jnp.maximum(h1 @ p["wa"] + p["ba"], 0.0)
    h3 = h2 @ p["wb"] + p["bb"]
    r = h1 + h3
    out = r @ p["wo"] + p["bo"]
    return out[..., 0]


if __name__ == "__main__":
    key = jax.random.PRNGKey(0)
    k_z, k_p, k_z2 = jax.random.split(key, 3)

    # Small shapes consistent with the module.
    B, N, dim, fd = 2, 8, 32, 16
    Z = jax.random.normal(k_z, (B, N, dim), jnp.float32)
    params = init_params(k_p, dim, fd)
    ref = ranking_head_ref(Z, params)

    # f32 MXU-operand path: exact-semantics check (single-tile regime).
    out_f32 = jax.block_until_ready(
        ranking_head(Z, params, compute_dtype=jnp.float32))
    assert out_f32.shape == (B, N)
    assert jnp.allclose(out_f32, ref, atol=1e-5, rtol=1e-5), float(
        jnp.max(jnp.abs(out_f32 - ref)))

    # Default path: bf16 MXU operands, f32 accumulation / elementwise.
    out_bf16 = jax.block_until_ready(ranking_head(Z, params))
    assert out_bf16.shape == (B, N)
    assert jnp.allclose(out_bf16, ref, atol=3e-2, rtol=3e-2), float(
        jnp.max(jnp.abs(out_bf16 - ref)))

    # Streaming regime: M = 2400 >= 2048 -> grid = 2 (parallel token axis for
    # the two v7x TCs), ragged last tile, lane-dense output slab, no x copies.
    B2, N2 = 3, 800
    Z2 = jax.random.normal(k_z2, (B2, N2, dim), jnp.float32)
    ref2 = ranking_head_ref(Z2, params)
    out2 = jax.block_until_ready(
        ranking_head(Z2, params, compute_dtype=jnp.float32))
    assert out2.shape == (B2, N2)
    assert jnp.allclose(out2, ref2, atol=1e-4, rtol=1e-4), float(
        jnp.max(jnp.abs(out2 - ref2)))

    print("KERNEL_OK")
</pallas_src>

<mosaic_0001>
module attributes {stable_mosaic.version = 11 : i64} {
  func.func @ranking_head_kernel(%arg0: i32, %arg1: memref<16x32xf32, #tpu.memory_space<vmem>>, %arg2: memref<32x128xf32, #tpu.memory_space<vmem>>, %arg3: memref<1x128xf32, #tpu.memory_space<vmem>>, %arg4: memref<128x128xf32, #tpu.memory_space<vmem>>, %arg5: memref<1x128xf32, #tpu.memory_space<vmem>>, %arg6: memref<2x128xf32, #tpu.memory_space<vmem>>, %arg7: memref<1xf32, #tpu.memory_space<smem>>, %arg8: memref<1x16xf32, #tpu.memory_space<vmem>>) attributes {dimension_semantics = [#tpu.dimension_semantics<parallel>], iteration_bounds = array<i64: 1>, scalar_prefetch = 0 : i64, scratch_operands = 0 : i64, tpu.core_type = #tpu.core_type<tc>, window_params = [{transform_indices = @transform_0, window_bounds = array<i64: 16, 32>}, {pipeline_mode = #tpu.pipeline_mode<synchronous>, transform_indices = @transform_1, window_bounds = array<i64: 32, 128>}, {pipeline_mode = #tpu.pipeline_mode<synchronous>, transform_indices = @transform_2, window_bounds = array<i64: 1, 128>}, {pipeline_mode = #tpu.pipeline_mode<synchronous>, transform_indices = @transform_3, window_bounds = array<i64: 128, 128>}, {pipeline_mode = #tpu.pipeline_mode<synchronous>, transform_indices = @transform_4, window_bounds = array<i64: 1, 128>}, {pipeline_mode = #tpu.pipeline_mode<synchronous>, transform_indices = @transform_5, window_bounds = array<i64: 2, 128>}, {transform_indices = @transform_6, window_bounds = array<i64: 1>}, {transform_indices = @transform_7, window_bounds = array<i64: 1, 16>}]} {
    %c0 = arith.constant 0 : index
    %c0_0 = arith.constant 0 : index
    %0 = vector.load %arg2[%c0, %c0_0] : memref<32x128xf32, #tpu.memory_space<vmem>>, vector<32x128xf32>
    %c0_1 = arith.constant 0 : index
    %c0_2 = arith.constant 0 : index
    %1 = vector.load %arg4[%c0_1, %c0_2] : memref<128x128xf32, #tpu.memory_space<vmem>>, vector<128x128xf32>
    %c0_3 = arith.constant 0 : index
    %c0_4 = arith.constant 0 : index
    %2 = vector.load %arg1[%c0_3, %c0_4] : memref<16x32xf32, #tpu.memory_space<vmem>>, vector<16x32xf32>
    %cst = arith.constant dense<0.000000e+00> : vector<16x128xf32>
    %3 = tpu.matmul %2, %0, %cst {dimension_numbers = #tpu.dot_dimension_numbers<[1], [0], [0], [1], [0, 0, 1, 1], [], []>} : vector<16x32xf32>, vector<32x128xf32>, vector<16x128xf32> -> vector<16x128xf32>
    %c0_5 = arith.constant 0 : index
    %c0_6 = arith.constant 0 : index
    %4 = vector.load %arg3[%c0_5, %c0_6] : memref<1x128xf32, #tpu.memory_space<vmem>>, vector<1x128xf32>
    %5 = vector.broadcast %4 : vector<1x128xf32> to vector<16x128xf32>
    %6 = arith.addf %3, %5 : vector<16x128xf32>
    %cst_7 = arith.constant dense<0.000000e+00> : vector<16x128xf32>
    %7 = tpu.matmul %6, %1, %cst_7 {dimension_numbers = #tpu.dot_dimension_numbers<[1], [0], [0], [1], [0, 0, 1, 1], [], []>} : vector<16x128xf32>, vector<128x128xf32>, vector<16x128xf32> -> vector<16x128xf32>
    %c0_8 = arith.constant 0 : index
    %c0_9 = arith.constant 0 : index
    %8 = vector.load %arg5[%c0_8, %c0_9] : memref<1x128xf32, #tpu.memory_space<vmem>>, vector<1x128xf32>
    %9 = vector.broadcast %8 : vector<1x128xf32> to vector<16x128xf32>
    %10 = arith.addf %7, %9 : vector<16x128xf32>
    %cst_10 = arith.constant 0.000000e+00 : f32
    %11 = vector.broadcast %cst_10 : f32 to vector<16x128xf32>
    %12 = arith.maximumf %10, %11 : vector<16x128xf32>
    %c0_11 = arith.constant 0 : index
    %c0_12 = arith.constant 0 : index
    %13 = vector.load %arg6[%c0_11, %c0_12] : memref<2x128xf32, #tpu.memory_space<vmem>>, vector<2x128xf32>
    %14 = vector.extract_strided_slice %13 {offsets = [0, 0], sizes = [1, 128], strides = [1, 1]} : vector<2x128xf32> to vector<1x128xf32>
    %15 = vector.broadcast %14 : vector<1x128xf32> to vector<16x128xf32>
    %16 = arith.mulf %6, %15 : vector<16x128xf32>
    %17 = vector.extract_strided_slice %13 {offsets = [1, 0], sizes = [1, 128], strides = [1, 1]} : vector<2x128xf32> to vector<1x128xf32>
    %18 = vector.broadcast %17 : vector<1x128xf32> to vector<16x128xf32>
    %19 = arith.mulf %12, %18 : vector<16x128xf32>
    %20 = arith.addf %16, %19 : vector<16x128xf32>
    %cst_13 = arith.constant dense<0.000000e+00> : vector<16xf32>
    %21 = vector.multi_reduction <add>, %20, %cst_13 [1] : vector<16x128xf32> to vector<16xf32>
    %c0_14 = arith.constant 0 : index
    %22 = memref.load %arg7[%c0_14] : memref<1xf32, #tpu.memory_space<smem>>
    %23 = vector.broadcast %22 : f32 to vector<16xf32>
    %24 = arith.addf %21, %23 : vector<16xf32>
    %25 = vector.shape_cast %24 : vector<16xf32> to vector<1x16xf32>
    %c0_15 = arith.constant 0 : index
    %c0_16 = arith.constant 0 : index
    %26 = vector.load %arg8[%c0_15, %c0_16] : memref<1x16xf32, #tpu.memory_space<vmem>>, vector<1x16xf32>
    tpu.vector_store %arg8[%c0_15, %c0_16], %25 {strides = array<i32>} : memref<1x16xf32, #tpu.memory_space<vmem>>, vector<1x16xf32>,
    return
  }
  func.func @transform_0(%arg0: i32) -> (i32, i32) {
    %c0_i32 = arith.constant 0 : i32
    %c0_i32_0 = arith.constant 0 : i32
    return %arg0, %c0_i32 : i32, i32
  }
  func.func @transform_1(%arg0: i32) -> (i32, i32) {
    %c0_i32 = arith.constant 0 : i32
    %c0_i32_0 = arith.constant 0 : i32
    %c0_i32_1 = arith.constant 0 : i32
    return %c0_i32, %c0_i32_0 : i32, i32
  }
  func.func @transform_2(%arg0: i32) -> (i32, i32) {
    %c0_i32 = arith.constant 0 : i32
    %c0_i32_0 = arith.constant 0 : i32
    %c0_i32_1 = arith.constant 0 : i32
    return %c0_i32, %c0_i32_0 : i32, i32
  }
  func.func @transform_3(%arg0: i32) -> (i32, i32) {
    %c0_i32 = arith.constant 0 : i32
    %c0_i32_0 = arith.constant 0 : i32
    %c0_i32_1 = arith.constant 0 : i32
    return %c0_i32, %c0_i32_0 : i32, i32
  }
  func.func @transform_4(%arg0: i32) -> (i32, i32) {
    %c0_i32 = arith.constant 0 : i32
    %c0_i32_0 = arith.constant 0 : i32
    %c0_i32_1 = arith.constant 0 : i32
    return %c0_i32, %c0_i32_0 : i32, i32
  }
  func.func @transform_5(%arg0: i32) -> (i32, i32) {
    %c0_i32 = arith.constant 0 : i32
    %c0_i32_0 = arith.constant 0 : i32
    %c0_i32_1 = arith.constant 0 : i32
    return %c0_i32, %c0_i32_0 : i32, i32
  }
  func.func @transform_6(%arg0: i32) -> i32 {
    %c0_i32 = arith.constant 0 : i32
    %c0_i32_0 = arith.constant 0 : i32
    return %c0_i32 : i32
  }
  func.func @transform_7(%arg0: i32) -> (i32, i32) {
    %c0_i32 = arith.constant 0 : i32
    %c0_i32_0 = arith.constant 0 : i32
    return %arg0, %c0_i32 : i32, i32
  }
}

</mosaic_0001>

<bundles_post_ra>
// kernel: ranking_head.1
= control target key start
LH: loop header
LB: loop body
LE: loop exit
PB: predicated region body
PF: predicated region fallthrough
CT: control target
= control target key end

     0   :  { %vm56_vm0 = vcmask 261120   ;;  %v223_v37 = vlaneseq  ;;  %vm258_vm1 = vcmask 130112   ;;  %vm261_vm2 = vcmask 122880   ;;  %s504_s1 = inlined_call_operand.vmem [shape: f32[32,128], index: 1, kind: input, shape index: {}]   ;;  %s505_s0 = inlined_call_operand.vmem [shape: f32[16,32], index: 0, kind: input, shape index: {}]   ;;  %s506_s3 = inlined_call_operand.vmem [shape: f32[128,128], index: 3, kind: input, shape index: {}]   ;;  %s507_s2 = inlined_call_operand.vmem [shape: f32[1,128], index: 2, kind: input, shape index: {}]   ;;  %s508_s5 = inlined_call_operand.vmem [shape: f32[2,128], index: 5, kind: input, shape index: {}]   ;;  %s509_s4 = inlined_call_operand.vmem [shape: f32[1,128], index: 4, kind: input, shape index: {}]   ;;  %s510_s6 = inlined_call_operand.<no memory space> [shape: f32[1], index: 6, kind: input, shape index: {}]   ;;  %s511_s7 = inlined_call_operand.vmem [shape: f32[1,16], index: 7, kind: output, shape index: {}]  }
   0x1   :  { %v27_v0 = vld [vmem:[%s504_s1] sm:$0xff]  ;;  %v28_v1 = vld [vmem:[%s504_s1 + $0x8] sm:$0xff]  ;;  %v29_v2 = vld [vmem:[%s504_s1 + $0x10] sm:$0xff]  ;;  %v242_v59 = vstv %s510_s6 }
   0x2   :  { %v341_v3 = vpack.c.bf16 %v28_v1, %v27_v0  ;;  %v30_v4 = vld [vmem:[%s504_s1 + $0x18] sm:$0xff]  ;;  %v47_v5 = vld [vmem:[%s505_s0] sm:$0xff]  ;;  %v32_v8 = vld [vmem:[%s506_s3 + $0x8] sm:$0xff]  ;;  %v224_v38 = vshrl.u32 %v223_v37, 7  ;;  %v248_v57 = vand.u32 127, %v223_v37 }
   0x3   :  { %v345_v6 = vpack.c.bf16 %v30_v4, %v29_v2  ;;  %303 = vmatprep.mubr.msk.f32.mxu0 %vm56_vm0, %v47_v5  ;;  %v31_v7 = vld [vmem:[%s506_s3] sm:$0xff]  ;;  %v33_v9 = vld [vmem:[%s506_s3 + $0x10] sm:$0xff]  ;;  %v34_v11 = vld [vmem:[%s506_s3 + $0x18] sm:$0xff] }
   0x4   :  { %342 = vmatprep.subr.bf16.mxu0 %v341_v3  ;;  %v349_v10 = vpack.c.bf16 %v32_v8, %v31_v7  ;;  %v353_v12 = vpack.c.bf16 %v34_v11, %v33_v9  ;;  %v35_v13 = vld [vmem:[%s506_s3 + $0x20] sm:$0xff]  ;;  %v36_v14 = vld [vmem:[%s506_s3 + $0x28] sm:$0xff]  ;;  %v37_v17 = vld [vmem:[%s506_s3 + $0x30] sm:$0xff]  ;;  %v225_v39 = vsub.s32 0, %v224_v38  ;;  %v231_v40 = vsub.s32 1, %v224_v38 }
   0x5   :  { %344 = vmatpush3.bf16.msra.mxu0 %v341_v3  ;;  %v357_v15 = vpack.c.bf16 %v36_v14, %v35_v13  ;;  %v48_v16 = vld [vmem:[%s505_s0 + $0x8] sm:$0xff]  ;;  %v38_v18 = vld [vmem:[%s506_s3 + $0x38] sm:$0xff]  ;;  %v39_v20 = vld [vmem:[%s506_s3 + $0x40] sm:$0xff]  ;;  %v253_v58 = vadd.s32 4294967288, %v248_v57  ;;  %v251_v61 = vsub.s32 %v248_v57, %v224_v38 }
   0x6   :  { %346 = vmatprep.subr.bf16.mxu0 %v345_v6  ;;  %350 = vmatprep.subr.bf16.mxu1 %v349_v10  ;;  %v361_v19 = vpack.c.bf16 %v38_v18, %v37_v17  ;;  %v40_v21 = vld [vmem:[%s506_s3 + $0x48] sm:$0xff]  ;;  %v41_v23 = vld [vmem:[%s506_s3 + $0x50] sm:$0xff]  ;;  %v42_v24 = vld [vmem:[%s506_s3 + $0x58] sm:$0xff] }
   0x7   :  { %352 = vmatpush3.bf16.msra.mxu1 %v349_v10  ;;  %v365_v22 = vpack.c.bf16 %v40_v21, %v39_v20  ;;  %v369_v25 = vpack.c.bf16 %v42_v24, %v41_v23  ;;  %v43_v26 = vld [vmem:[%s506_s3 + $0x60] sm:$0xff]  ;;  %v44_v27 = vld [vmem:[%s506_s3 + $0x68] sm:$0xff]  ;;  %v45_v29 = vld [vmem:[%s506_s3 + $0x70] sm:$0xff]  ;;  %v256_v63 = vsub.s32 %v253_v58, %v224_v38 }
   0x8   :  { %354 = vmatprep.subr.bf16.mxu1 %v353_v12  ;;  %v373_v28 = vpack.c.bf16 %v44_v27, %v43_v26  ;;  %v46_v30 = vld [vmem:[%s506_s3 + $0x78] sm:$0xff]  ;;  %v267_v32 = vld [vmem:[%s507_s2] ss:$0 sm:$0xff] }
   0x9   :  { %348 = vmatpush3.bf16.msra.mxu0 %v345_v6  ;;  %v377_v31 = vpack.c.bf16 %v46_v30, %v45_v29  ;;  %v222_v41 = vld [vmem:[%s508_s5] sm:$0x3] }
   0xa   :  { %v270_v42 = vld [vmem:[%s509_s4] ss:$0 sm:$0xff]  ;;  %v226_v44 = vrot.slane %v222_v41, %v225_v39  ;;  %v232_v46 = vrot.slane %v222_v41, %v231_v40 }
   0xb   :  { %356 = vmatpush3.bf16.msra.mxu1 %v353_v12 }
   0xc   :  { %304 = vmatmul.mubr.msk.f32.vlgmr.msra.gmra.mrb[0].mxu0 %vm56_vm0, %v48_v16  ;;  %358 = vmatprep.subr.bf16.mxu1 %v357_v15 }
   0xf   :  { %360 = vmatpush3.bf16.msra.mxu1 %v357_v15 }
  0x10   :  { %362 = vmatprep.subr.bf16.mxu1 %v361_v19 }
  0x13   :  { %364 = vmatpush3.bf16.msra.mxu1 %v361_v19 }
  0x14   :  { %366 = vmatprep.subr.bf16.mxu1 %v365_v22 }
  0x17   :  { %368 = vmatpush3.bf16.msra.mxu1 %v365_v22 }
  0x18   :  { %370 = vmatprep.subr.bf16.mxu1 %v369_v25 }
  0x1b   :  { %372 = vmatpush3.bf16.msra.mxu1 %v369_v25 }
  0x1c   :  { %374 = vmatprep.subr.bf16.mxu1 %v373_v28 }
  0x1f   :  { %376 = vmatpush3.bf16.msra.mxu1 %v373_v28 }
  0x20   :  { %378 = vmatprep.subr.bf16.mxu1 %v377_v31 }
  0x23   :  { %380 = vmatpush3.bf16.msra.mxu1 %v377_v31 }
  0xdf   :  { %v305_v33 = vpop.f32.mrb[0].mxu0 }
  0xe0   :  { %v129_v34 = vpop.f32.mrb[1].mxu0  ;;  %v135_v36 = vadd.f32 %v305_v33, %v267_v32 }
  0xe1   :  { %v130_v35 = vadd.f32 %v267_v32, %v129_v34 }
  0xe2   :  { %v228_v51 = vmul.f32 %v226_v44, %v135_v36 }
  0xe3   :  { %338 = vmatprep.mubr.f32.mxu1 %v130_v35  ;;  %v227_v53 = vmul.f32 %v226_v44, %v130_v35 }
  0xe4   :  { %339 = vmatmul.mubr.f32.vlgmr.msra.gmra.mrb[0].mxu1 %v135_v36 }
 0x1b7   :  { %v340_v43 = vpop.f32.mrb[0].mxu1 }
 0x1b8   :  { %v217_v45 = vadd.f32 %v340_v43, %v270_v42  ;;  %v211_v47 = vpop.f32.mrb[1].mxu1 }
 0x1b9   :  { %v212_v48 = vadd.f32 %v270_v42, %v211_v47 }
 0x1ba   :  { %v221_v49 = vmax.f32 %v217_v45, 0.0 }
 0x1bb   :  { %v220_v50 = vmax.f32 %v212_v48, 0.0 }
 0x1bc   :  { %v234_v52 = vmul.f32 %v232_v46, %v221_v49 }
 0x1bd   :  { %v233_v54 = vmul.f32 %v232_v46, %v220_v50 }
 0x1be   :  { %v236_v55 = vadd.f32 %v234_v52, %v228_v51 }
 0x1bf   :  { %v235_v56 = vadd.f32 %v233_v54, %v227_v53 }
 0x1c1   :  { %237 = vadd.xlane.f32.xlu0 %v235_v56 }
 0x1c5   :  { %239 = vadd.xlane.f32.xlu0 %v236_v55 }
 0x24e   :  { %v238_v60 = vpop.xlane.xlu0 %237 }
 0x24f   :  { %v243_v62 = vadd.f32 %v242_v59, %v238_v60 }
 0x251   :  { %v252_v2 = vrot.slane %v243_v62, %v251_v61 }
 0x252   :  { %v240_v0 = vpop.xlane.xlu0 %239 }
 0x253   :  { %v244_v1 = vadd.f32 %v242_v59, %v240_v0 }
 0x255   :  { %v257_v3 = vrot.slane %v244_v1, %v256_v63 }
 0x257   :  { %v259_v4 = vsel %vm258_vm1, %v257_v3, %v252_v2 }
 0x258   :  { %262 = vst.msk [vmem:[%s511_s7] sm:$0x1] %vm261_vm2, %v259_v4 }

</bundles_post_ra>
